<compile_context>
chip_gen: v6e
topology: v6e:2x2x1
jax: 0.10.0
libtpu: 0.0.40
codegen_flags: <defaults>
</compile_context>

<pallas_src>
import jax
import jax.numpy as jnp
from jax.experimental import pallas as pl
from jax.experimental.pallas import tpu as pltpu

EPS = 1e-5
NEG_SLOPE = 0.1


def _make_kernel(m_true, eps, neg_slope):
    inv_m = 1.0 / float(m_true)

    def kernel(pt_ref, w_ref, g_ref, b_ref, o_ref, s1_ref, s2_ref):
        # pt_ref: (K, TM)    bf16 im2col columns for this M tile (zero-padded past m_true)
        # w_ref:  (Cout, K)  bf16 conv weight, resident (constant index_map)
        # g_ref:  (Cout, 1)  f32 BN gamma
        # b_ref:  (Cout, 1)  f32 BN beta
        # o_ref:  (Cout, TM) f32 output tile (lane-dense)
        # s1_ref/s2_ref: (Cout, 1) f32 scratch: running sum / sum-of-squares over M
        p = pl.program_id(0)   # 0 = stats pass, 1 = normalize pass
        i = pl.program_id(1)   # M-tile index

        # Conv as a lane-dense MXU matmul: (Cout, K) @ (K, TM) -> (Cout, TM), f32 accum.
        conv = jnp.dot(w_ref[...], pt_ref[...],
                       preferred_element_type=jnp.float32)

        @pl.when((p == 0) & (i == 0))
        def _():
            s1_ref[...] = jnp.zeros_like(s1_ref)
            s2_ref[...] = jnp.zeros_like(s2_ref)

        @pl.when(p == 0)
        def _():
            # Padded (zero) columns contribute exactly 0 to both sums.
            s1_ref[...] += jnp.sum(conv, axis=-1, keepdims=True)
            s2_ref[...] += jnp.sum(conv * conv, axis=-1, keepdims=True)

        @pl.when(p == 1)
        def _():
            mean = s1_ref[...] * inv_m                        # (Cout, 1)
            var = s2_ref[...] * inv_m - mean * mean           # biased variance
            inv_std = jax.lax.rsqrt(var + eps)
            scale = g_ref[...] * inv_std                      # fold BN affine
            shift = b_ref[...] - mean * scale
            y = conv * scale + shift
            o_ref[...] = jnp.where(y >= 0, y, neg_slope * y)  # LeakyReLU(0.1)

    return kernel


def downsample_layer(x_nchw, w_oihw, gamma, beta):
    """x_nchw: (N, Cin, H, W) f32 -> (N, Cout, Ho, Wo) f32."""
    N, Cin, H, W = x_nchw.shape
    Cout = w_oihw.shape[0]
    KH = KW = 3
    S = 2
    Ho = (H + 2 - KH) // S + 1
    Wo = (W + 2 - KW) // S + 1
    M = N * Ho * Wo
    K = KH * KW * Cin

    TM = 512 if M >= 512 else 128          # lane-dense M tile
    n_tiles = pl.cdiv(M, TM)
    M_pad = n_tiles * TM

    # --- glue: channel-first, zero-pad spatial, build transposed im2col (K, M) in bf16 ---
    x_c = jnp.transpose(x_nchw, (1, 0, 2, 3))                 # (Cin, N, H, W)
    x_p = jnp.pad(x_c, ((0, 0), (0, 0), (1, 1), (1, 1)))      # (Cin, N, H+2, W+2)
    taps = [x_p[:, :, kh:kh + S * Ho:S, kw:kw + S * Wo:S]     # (Cin, N, Ho, Wo) each
            for kh in range(KH) for kw in range(KW)]
    patches_t = jnp.stack(taps, axis=0).reshape(K, M)         # K ordered (kh, kw, cin)
    patches_t = jnp.pad(patches_t, ((0, 0), (0, M_pad - M))).astype(jnp.bfloat16)

    # Conv weight (Cout, Cin, KH, KW) -> (Cout, KH, KW, Cin) -> (Cout, K), matching K order.
    w_t = jnp.transpose(w_oihw, (0, 2, 3, 1)).reshape(Cout, K).astype(jnp.bfloat16)
    g = gamma.reshape(Cout, 1).astype(jnp.float32)
    b = beta.reshape(Cout, 1).astype(jnp.float32)

    kernel = _make_kernel(M, EPS, NEG_SLOPE)

    out_t = pl.pallas_call(
        kernel,
        out_shape=jax.ShapeDtypeStruct((Cout, M_pad), jnp.float32),
        grid_spec=pltpu.PrefetchScalarGridSpec(
            num_scalar_prefetch=0,
            grid=(2, n_tiles),  # (pass, M tile); pass is the slow axis
            in_specs=[
                pl.BlockSpec((K, TM), lambda p, i: (0, i)),      # im2col tile
                pl.BlockSpec((Cout, K), lambda p, i: (0, 0)),    # weight, resident
                pl.BlockSpec((Cout, 1), lambda p, i: (0, 0)),    # gamma, resident
                pl.BlockSpec((Cout, 1), lambda p, i: (0, 0)),    # beta, resident
            ],
            out_specs=pl.BlockSpec((Cout, TM), lambda p, i: (0, i)),
            scratch_shapes=[pltpu.VMEM((Cout, 1), jnp.float32),
                            pltpu.VMEM((Cout, 1), jnp.float32)],
        ),
        compiler_params=pltpu.CompilerParams(
            # Both axes must be "arbitrary": the shared BN-stats scratch is accumulated
            # sequentially across M tiles, then consumed in pass 1.
            dimension_semantics=("arbitrary", "arbitrary")),
    )(patches_t, w_t, g, b)

    out = out_t[:, :M].reshape(Cout, N, Ho, Wo)
    return jnp.transpose(out, (1, 0, 2, 3))


def _reference(x, w, gamma, beta):
    """Pure-JAX reference of the PyTorch train-mode forward."""
    conv = jax.lax.conv_general_dilated(
        x, w, window_strides=(2, 2), padding=((1, 1), (1, 1)),
        dimension_numbers=("NCHW", "OIHW", "NCHW"))
    mean = jnp.mean(conv, axis=(0, 2, 3), keepdims=True)
    var = jnp.mean((conv - mean) ** 2, axis=(0, 2, 3), keepdims=True)
    y = (conv - mean) * jax.lax.rsqrt(var + EPS)
    y = y * gamma.reshape(1, -1, 1, 1) + beta.reshape(1, -1, 1, 1)
    return jnp.where(y >= 0, y, NEG_SLOPE * y)


if __name__ == "__main__":
    # Small shapes consistent with the module: batch=2, in_channels=4,
    # spatial=16x16, out_channels=8.
    N, Cin, H, W = 2, 4, 16, 16
    Cout = 8

    key = jax.random.PRNGKey(0)
    kx, kw = jax.random.split(key)
    x = jax.random.normal(kx, (N, Cin, H, W), dtype=jnp.float32)

    # Deterministic synthetic parameters (no checkpoint): Conv2d weight, BN affine.
    w = 0.1 * jax.random.normal(kw, (Cout, Cin, 3, 3), dtype=jnp.float32)
    gamma = jnp.linspace(0.5, 1.5, Cout, dtype=jnp.float32)
    beta = jnp.linspace(-0.1, 0.1, Cout, dtype=jnp.float32)

    y = downsample_layer(x, w, gamma, beta)
    jax.block_until_ready(y)

    assert y.shape == (N, Cout, H // 2, W // 2), y.shape
    assert bool(jnp.all(jnp.isfinite(y)))

    # Loose tolerance: the matmul operands are bf16 (f32 accumulation / BN math).
    y_ref = _reference(x, w, gamma, beta)
    max_err = float(jnp.max(jnp.abs(y - y_ref)))
    assert max_err < 1e-1, f"max abs error vs reference: {max_err}"

    print("KERNEL_OK")
</pallas_src>

<mosaic_0001>
module attributes {stable_mosaic.version = 11 : i64} {
  func.func @kernel(%arg0: i32, %arg1: i32, %arg2: memref<36x128xbf16, #tpu.memory_space<vmem>>, %arg3: memref<8x36xbf16, #tpu.memory_space<vmem>>, %arg4: memref<8x1xf32, #tpu.memory_space<vmem>>, %arg5: memref<8x1xf32, #tpu.memory_space<vmem>>, %arg6: memref<8x128xf32, #tpu.memory_space<vmem>>, %arg7: memref<8x1xf32, #tpu.memory_space<vmem>>, %arg8: memref<8x1xf32, #tpu.memory_space<vmem>>) attributes {dimension_semantics = [#tpu.dimension_semantics<arbitrary>, #tpu.dimension_semantics<arbitrary>], iteration_bounds = array<i64: 2, 1>, scalar_prefetch = 0 : i64, scratch_operands = 2 : i64, tpu.core_type = #tpu.core_type<tc>, window_params = [{transform_indices = @transform_0, window_bounds = array<i64: 36, 128>}, {pipeline_mode = #tpu.pipeline_mode<synchronous>, transform_indices = @transform_1, window_bounds = array<i64: 8, 36>}, {pipeline_mode = #tpu.pipeline_mode<synchronous>, transform_indices = @transform_2, window_bounds = array<i64: 8, 1>}, {pipeline_mode = #tpu.pipeline_mode<synchronous>, transform_indices = @transform_3, window_bounds = array<i64: 8, 1>}, {transform_indices = @transform_4, window_bounds = array<i64: 8, 128>}]} {
    %c0 = arith.constant 0 : index
    %c0_0 = arith.constant 0 : index
    %0 = vector.load %arg3[%c0, %c0_0] : memref<8x36xbf16, #tpu.memory_space<vmem>>, vector<8x36xbf16>
    %c0_1 = arith.constant 0 : index
    %c0_2 = arith.constant 0 : index
    %1 = vector.load %arg2[%c0_1, %c0_2] : memref<36x128xbf16, #tpu.memory_space<vmem>>, vector<36x128xbf16>
    %cst = arith.constant dense<0.000000e+00> : vector<8x128xf32>
    %2 = tpu.matmul %0, %1, %cst {dimension_numbers = #tpu.dot_dimension_numbers<[1], [0], [0], [1], [0, 0, 1, 1], [], []>} : vector<8x36xbf16>, vector<36x128xbf16>, vector<8x128xf32> -> vector<8x128xf32>
    %c0_i32 = arith.constant 0 : i32
    %3 = arith.cmpi eq, %arg0, %c0_i32 : i32
    %c0_i32_3 = arith.constant 0 : i32
    %4 = arith.cmpi eq, %arg1, %c0_i32_3 : i32
    %5 = arith.andi %3, %4 : i1
    %6 = arith.extui %5 : i1 to i32
    %c0_i32_4 = arith.constant 0 : i32
    %7 = arith.cmpi ne, %6, %c0_i32_4 : i32
    scf.if %7 {
      %cst_8 = arith.constant 0.000000e+00 : f32
      %14 = vector.broadcast %cst_8 : f32 to vector<8x1xf32>
      %c0_9 = arith.constant 0 : index
      %c0_10 = arith.constant 0 : index
      %15 = vector.load %arg7[%c0_9, %c0_10] : memref<8x1xf32, #tpu.memory_space<vmem>>, vector<8x1xf32>
      tpu.vector_store %arg7[%c0_9, %c0_10], %14 {strides = array<i32>} : memref<8x1xf32, #tpu.memory_space<vmem>>, vector<8x1xf32>,
      %cst_11 = arith.constant 0.000000e+00 : f32
      %16 = vector.broadcast %cst_11 : f32 to vector<8x1xf32>
      %c0_12 = arith.constant 0 : index
      %c0_13 = arith.constant 0 : index
      %17 = vector.load %arg8[%c0_12, %c0_13] : memref<8x1xf32, #tpu.memory_space<vmem>>, vector<8x1xf32>
      tpu.vector_store %arg8[%c0_12, %c0_13], %16 {strides = array<i32>} : memref<8x1xf32, #tpu.memory_space<vmem>>, vector<8x1xf32>,
    } else {
    }
    %c0_i32_5 = arith.constant 0 : i32
    %8 = arith.cmpi eq, %arg0, %c0_i32_5 : i32
    %9 = arith.extui %8 : i1 to i32
    %c0_i32_6 = arith.constant 0 : i32
    %10 = arith.cmpi ne, %9, %c0_i32_6 : i32
    scf.if %10 {
      %c0_8 = arith.constant 0 : index
      %c0_9 = arith.constant 0 : index
      %14 = vector.load %arg7[%c0_8, %c0_9] : memref<8x1xf32, #tpu.memory_space<vmem>>, vector<8x1xf32>
      %cst_10 = arith.constant dense<0.000000e+00> : vector<8xf32>
      %15 = vector.multi_reduction <add>, %2, %cst_10 [1] : vector<8x128xf32> to vector<8xf32>
      %16 = vector.shape_cast %15 : vector<8xf32> to vector<8x1xf32>
      %17 = arith.addf %14, %16 : vector<8x1xf32>
      %c0_11 = arith.constant 0 : index
      %c0_12 = arith.constant 0 : index
      %18 = vector.load %arg7[%c0_11, %c0_12] : memref<8x1xf32, #tpu.memory_space<vmem>>, vector<8x1xf32>
      tpu.vector_store %arg7[%c0_11, %c0_12], %17 {strides = array<i32>} : memref<8x1xf32, #tpu.memory_space<vmem>>, vector<8x1xf32>,
      %c0_13 = arith.constant 0 : index
      %c0_14 = arith.constant 0 : index
      %19 = vector.load %arg8[%c0_13, %c0_14] : memref<8x1xf32, #tpu.memory_space<vmem>>, vector<8x1xf32>
      %20 = arith.mulf %2, %2 : vector<8x128xf32>
      %cst_15 = arith.constant dense<0.000000e+00> : vector<8xf32>
      %21 = vector.multi_reduction <add>, %20, %cst_15 [1] : vector<8x128xf32> to vector<8xf32>
      %22 = vector.shape_cast %21 : vector<8xf32> to vector<8x1xf32>
      %23 = arith.addf %19, %22 : vector<8x1xf32>
      %c0_16 = arith.constant 0 : index
      %c0_17 = arith.constant 0 : index
      %24 = vector.load %arg8[%c0_16, %c0_17] : memref<8x1xf32, #tpu.memory_space<vmem>>, vector<8x1xf32>
      tpu.vector_store %arg8[%c0_16, %c0_17], %23 {strides = array<i32>} : memref<8x1xf32, #tpu.memory_space<vmem>>, vector<8x1xf32>,
    } else {
    }
    %c1_i32 = arith.constant 1 : i32
    %11 = arith.cmpi eq, %arg0, %c1_i32 : i32
    %12 = arith.extui %11 : i1 to i32
    %c0_i32_7 = arith.constant 0 : i32
    %13 = arith.cmpi ne, %12, %c0_i32_7 : i32
    scf.if %13 {
      %c0_8 = arith.constant 0 : index
      %c0_9 = arith.constant 0 : index
      %14 = vector.load %arg7[%c0_8, %c0_9] : memref<8x1xf32, #tpu.memory_space<vmem>>, vector<8x1xf32>
      %cst_10 = arith.constant 7.812500e-03 : f32
      %15 = vector.broadcast %cst_10 : f32 to vector<8x1xf32>
      %16 = arith.mulf %14, %15 : vector<8x1xf32>
      %c0_11 = arith.constant 0 : index
      %c0_12 = arith.constant 0 : index
      %17 = vector.load %arg8[%c0_11, %c0_12] : memref<8x1xf32, #tpu.memory_space<vmem>>, vector<8x1xf32>
      %cst_13 = arith.constant 7.812500e-03 : f32
      %18 = vector.broadcast %cst_13 : f32 to vector<8x1xf32>
      %19 = arith.mulf %17, %18 : vector<8x1xf32>
      %20 = arith.mulf %16, %16 : vector<8x1xf32>
      %21 = arith.subf %19, %20 : vector<8x1xf32>
      %cst_14 = arith.constant 9.99999974E-6 : f32
      %22 = vector.broadcast %cst_14 : f32 to vector<8x1xf32>
      %23 = arith.addf %21, %22 : vector<8x1xf32>
      %24 = math.rsqrt %23 : vector<8x1xf32>
      %c0_15 = arith.constant 0 : index
      %c0_16 = arith.constant 0 : index
      %25 = vector.load %arg4[%c0_15, %c0_16] : memref<8x1xf32, #tpu.memory_space<vmem>>, vector<8x1xf32>
      %26 = arith.mulf %25, %24 : vector<8x1xf32>
      %c0_17 = arith.constant 0 : index
      %c0_18 = arith.constant 0 : index
      %27 = vector.load %arg5[%c0_17, %c0_18] : memref<8x1xf32, #tpu.memory_space<vmem>>, vector<8x1xf32>
      %28 = arith.mulf %16, %26 : vector<8x1xf32>
      %29 = arith.subf %27, %28 : vector<8x1xf32>
      %30 = vector.broadcast %26 : vector<8x1xf32> to vector<8x128xf32>
      %31 = arith.mulf %2, %30 : vector<8x128xf32>
      %32 = vector.broadcast %29 : vector<8x1xf32> to vector<8x128xf32>
      %33 = arith.addf %31, %32 : vector<8x128xf32>
      %cst_19 = arith.constant 0.000000e+00 : f32
      %34 = vector.broadcast %cst_19 : f32 to vector<8x128xf32>
      %35 = arith.cmpf oge, %33, %34 : vector<8x128xf32>
      %cst_20 = arith.constant 1.000000e-01 : f32
      %36 = vector.broadcast %cst_20 : f32 to vector<8x128xf32>
      %37 = arith.mulf %36, %33 : vector<8x128xf32>
      %38 = arith.select %35, %33, %37 : vector<8x128xi1>, vector<8x128xf32>
      %c0_21 = arith.constant 0 : index
      %c0_22 = arith.constant 0 : index
      %39 = vector.load %arg6[%c0_21, %c0_22] : memref<8x128xf32, #tpu.memory_space<vmem>>, vector<8x128xf32>
      tpu.vector_store %arg6[%c0_21, %c0_22], %38 {strides = array<i32>} : memref<8x128xf32, #tpu.memory_space<vmem>>, vector<8x128xf32>,
    } else {
    }
    return
  }
  func.func @transform_0(%arg0: i32, %arg1: i32) -> (i32, i32) {
    %c0_i32 = arith.constant 0 : i32
    %c0_i32_0 = arith.constant 0 : i32
    return %c0_i32, %arg1 : i32, i32
  }
  func.func @transform_1(%arg0: i32, %arg1: i32) -> (i32, i32) {
    %c0_i32 = arith.constant 0 : i32
    %c0_i32_0 = arith.constant 0 : i32
    %c0_i32_1 = arith.constant 0 : i32
    return %c0_i32, %c0_i32_0 : i32, i32
  }
  func.func @transform_2(%arg0: i32, %arg1: i32) -> (i32, i32) {
    %c0_i32 = arith.constant 0 : i32
    %c0_i32_0 = arith.constant 0 : i32
    %c0_i32_1 = arith.constant 0 : i32
    return %c0_i32, %c0_i32_0 : i32, i32
  }
  func.func @transform_3(%arg0: i32, %arg1: i32) -> (i32, i32) {
    %c0_i32 = arith.constant 0 : i32
    %c0_i32_0 = arith.constant 0 : i32
    %c0_i32_1 = arith.constant 0 : i32
    return %c0_i32, %c0_i32_0 : i32, i32
  }
  func.func @transform_4(%arg0: i32, %arg1: i32) -> (i32, i32) {
    %c0_i32 = arith.constant 0 : i32
    %c0_i32_0 = arith.constant 0 : i32
    return %c0_i32, %arg1 : i32, i32
  }
}

</mosaic_0001>

<bundles_post_ra>
// kernel: tpu_custom_call.1
= control target key start
LH: loop header
LB: loop body
LE: loop exit
PB: predicated region body
PF: predicated region fallthrough
CT: control target
= control target key end

     0   :  { %9 = vsyncpa [#allocation5], 0  ;;  %s673_s0 = inlined_call_operand.hbm [shape: bf16[36,128], index: 0, kind: input, shape index: {}]   ;;  %s674_s1 = inlined_call_operand.vmem [shape: bf16[8,36], index: 1, kind: input, shape index: {}]   ;;  %s675_s2 = inlined_call_operand.vmem [shape: f32[8,1], index: 2, kind: input, shape index: {}]   ;;  %s676_s3 = inlined_call_operand.vmem [shape: f32[8,1], index: 3, kind: input, shape index: {}]   ;;  %s677_s4 = inlined_call_operand.hbm [shape: f32[8,128], index: 4, kind: output, shape index: {}]  }
   0x1   :  { %10 = vsyncpa [#allocation6], 0  ;;  %s591_s15 = smov 0   ;;  %s593_s16 = smov 0  }
   0x2   :  { %s595_s17 = smov 0  }
   0x3 LB: > { %s391_s18 = sadd.s32 4294967295, %s556_s17   ;;  %s28_s19 = sadd.s32 1, %s552_s16  ;;  %s556_s17 = sphi %s595_s17, %s16_s17   ;;  %s552_s16 = sphi %s593_s16, %s682_s16   ;;  %s548_s15 = sphi %s591_s15, %s681_s15  }
   0x4   : > { %p30_p0 = scmp.ge.s32.totalorder %s28_s19, 2  ;;  %p392_p1 = scmp.ge.s32.totalorder %s556_s17, 1 }
   0x5   : > { %p148_p2 = scmp.lt.s32.totalorder %s556_s17, 3  ;;  %p618_p4 = scmp.eq.s32.totalorder %s391_s18, 0 }
   0x6   : > { %s684_s19 = smov (%p30_p0, %s28_s19), 0  ;;  %s558_s22 = smov [#allocation4]  }
   0x7   : > { %p612_p3 = pnand %p392_p1, %p148_p2  ;;  %s162_s23 = sshll.u32 %s558_s22, 4  ;;  %s163_s23 = int_to_ptr.vmem [resolvable:$true] %s162_s23 }
   0x8   : > { %s487_s24 = scalar_lea.vmem %s163_s23, 320  ;;  %p495_p11 = scmp.lt.s32.totalorder %s163_s23, %s163_s23 }
   0x9   : > { %p430_p5 = pneg %p612_p3  ;;  %p488_p8 = scmp.ne.s32.totalorder %s163_s23, %s487_s24 }
   0xa   : > { %p496_p12 = scmp.lt.s32.totalorder %s487_s24, %s487_s24 }
   0xb   : > { %p431_p6 = pnand %p618_p4, %p430_p5 }
   0xc   : > { %p497_p13 = por %p496_p12, %p495_p11 }
   0xd   : > { %p478_p7 = pneg %p431_p6 }
   0xf   : > { %p490_p9 = pnand %p488_p8, %p478_p7 }
  0x11   : > { %p491_p10 = pneg %p490_p9 }
  0x13   : > { %p498_p0 = pnand %p497_p13, %p491_p10 }
  0x15   : > { %501 = shalt.err (!%p498_p0)
}
  0x16   : > { %s559_s25 = smov 64   ;;  %s560_s26 = smov 4  }
  0x17   : > { %433 = dma.hbm_to_vmem [thread:$0]  (!%p431_p6), %s673_s0, 320, %s163_s23, [#allocation5], %s559_s25, %s559_s25, %s560_s26  }
  0x18   : > { %187 = sbr.rel (%p612_p3) target bundleno = 576 (0x240), region = 36 }
  0x1d   : > { %539 = dma.done.wait (%p618_p4), [#allocation5], 320  }
  0x1e   : > { %541 = vsyncadd (%p618_p4), [#allocation5], 4294966976  ;;  %v561_v0 = vmov 0.0   ;;  %vm562_vm0 = vmmov 0   ;;  %vm229_vm1 = vcmask 1041408   ;;  %v471_v3 = vld [vmem:[#allocation4 + $0x8] sm:$0xff]  }
  0x1f   : > { %412 = vmatprep.subr.bf16.mxu0 %v561_v0  ;;  %418 = vmatprep.mubr.msk.bf16.mxu0 %vm562_vm0, %v561_v0  ;;  %v470_v1 = vld [vmem:[#allocation4 + $0x10] ss:$0 sps:$4 sm:$0x33]   ;;  %v472_v4 = vld [vmem:[#allocation4] sm:$0xff]   ;;  %vm225_vm2 = vcmask 293888   ;;  %p273_p1 = scmp.eq.s32.totalorder %s548_s15, 0 }
  0x20   : > { %v231_v2 = vsel %vm229_vm1, %v470_v1, 0  ;;  %v204_v5 = vld [vmem:[%s674_s1] sm:$0xf]  ;;  %vm279_vm3 = vcmask (%p273_p1), 7168   ;;  %v563_v10 = vmov (%p273_p1), 0.0  }
  0x21   : > { %413 = vmatpush3.bf16.msra.mxu0 %v231_v2  ;;  %280 = vst.msk [vmem:[#allocation2] sm:$0xff] (%p273_p1), %vm279_vm3, %v563_v10  ;;  %281 = vst.msk [vmem:[#allocation3] sm:$0xff] (%p273_p1), %vm279_vm3, %v563_v10 }
  0x22   : > { %414 = vmatprep.subr.bf16.mxu0 %v561_v0 }
  0x25   : > { %415 = vmatpush3.bf16.msra.mxu0 %v471_v3 }
  0x26   : > { %416 = vmatprep.subr.bf16.mxu0 %v561_v0 }
  0x29   : > { %417 = vmatpush3.bf16.msra.mxu0 %v472_v4 }
  0x2c   : > { %419 = vmatmul.mubr.msk.bf16.vlgmr.msra.gmra.mxu0 %vm225_vm2, %v204_v5 }
  0xec   : > { %v267_v6 = vpop.f32.mrf.mxu0 }
  0xee   : > { %v420_v7 = vpop.f32.mrf.mxu0  ;;  %278 = sbr.rel (!%p273_p1) target bundleno = 243 (0xf3), region = 44 }
  0xf0   : > { %v270_v8 = vpop.f32.mrf.mxu0 }
  0xf2   : > { %v421_v9 = vpop.f32.mrf.mxu0 }
  0xf3 PF: > { %p401_p2 = scmp.ne.s32.totalorder %s548_s15, 0 }
  0xf5   : > { %284 = sbr.rel (%p401_p2) target bundleno = 395 (0x18b), region = 48 }
  0xfa   : > { %286 = vadd.xlane.f32.xlu0 %v267_v6  ;;  %v292_v11 = vmul.f32 %v267_v6, %v267_v6  ;;  %v285_v12 = vld [vmem:[#allocation2] sm:$0xff]  ;;  %vm289_vm4 = vcmask 7168   ;;  %v291_v15 = vld [vmem:[#allocation3] sm:$0xff] }
  0xfe   : > { %293 = vadd.xlane.f32.xlu0 %v292_v11 }
 0x183   : > { %v287_v13 = vpop.xlane.xlu0 %286 }
 0x184   : > { %v288_v14 = vadd.f32 %v287_v13, %v285_v12 }
 0x186   : > { %290 = vst.msk [vmem:[#allocation2] sm:$0xff] %vm289_vm4, %v288_v14 }
 0x187   : > { %v294_v16 = vpop.xlane.xlu0 %293 }
 0x188   : > { %v295_v17 = vadd.f32 %v294_v16, %v291_v15 }
 0x18a   : > { %296 = vst.msk [vmem:[#allocation3] sm:$0xff] %vm289_vm4, %v295_v17 }
 0x18b PF: > { %p402_p3 = scmp.ne.s32.totalorder %s548_s15, 1 }
 0x18d   : > { %300 = sbr.rel (%p402_p3) target bundleno = 561 (0x231), region = 52 }
 0x192   : > { %v301_v18 = vld [vmem:[#allocation2] sm:$0xff]  ;;  %v303_v19 = vld [vmem:[#allocation3] sm:$0xff]  ;;  %v564_v20 = vmov 0  }
 0x193   : > { %473 = vset.pattern.permute.xlu0 %v564_v20  ;;  %v302_v21 = vmul.f32 0.0078125, %v301_v18  ;;  %v304_v22 = vmul.f32 0.0078125, %v303_v19  ;;  %v309_v26 = vld [vmem:[%s675_s2] sm:$0xff] }
 0x194   : > { %v311_v29 = vld [vmem:[%s676_s3] sm:$0xff] }
 0x195   : > { %v305_v23 = vmul.f32 %v302_v21, %v302_v21 }
 0x197   : > { %v306_v24 = vsub.f32 %v304_v22, %v305_v23 }
 0x199   : > { %v307_v25 = vadd.f32 1e-05, %v306_v24 }
 0x19b   : > { %474 = vrsqrt.f32 %v307_v25 }
 0x1a8   : > { %v475_v27 = vpop.eup %474 }
 0x1a9   : > { %v310_v28 = vmul.f32 %v475_v27, %v309_v26 }
 0x1ab   : > { %316 = vperm.xlu0 %473, %v310_v28   ;;  %v312_v30 = vmul.f32 %v310_v28, %v302_v21 }
 0x1ad   : > { %v313_v31 = vsub.f32 %v311_v29, %v312_v30 }
 0x1af   : > { %322 = vperm.xlu0 %473, %v313_v31  }
 0x226   : > { %v317_v32 = vpop.permute.xlu0 %316 }
 0x227   : > { %v319_v33 = vmul.f32 %v317_v32, %v267_v6 }
 0x22a   : > { %v323_v34 = vpop.permute.xlu0 %322 }
 0x22b   : > { %v325_v35 = vadd.f32 %v323_v34, %v319_v33 }
 0x22d   : > { %vm326_vm5 = vcmp.ge.f32.partialorder %v325_v35, 0.0  ;;  %v327_v36 = vmul.f32 0.1, %v325_v35 }
 0x22f   : > { %v328_v37 = vsel %vm326_vm5, %v325_v35, %v327_v36 }
 0x230   : > { %329 = vst [vmem:[#allocation7] sm:$0xff] %v328_v37 }
 0x231 PF: > { %p649_p4 = scmp.eq.s32.totalorder %s391_s18, 1  ;;  %s565_s10 = smov [#allocation7]  }
 0x232   : > { %s339_s11 = sshll.u32 %s565_s10, 4  ;;  %s340_s11 = int_to_ptr.vmem [resolvable:$true] %s339_s11 }
 0x233   : > { %s502_s12 = scalar_lea.vmem %s340_s11, 128  ;;  %p509_p8 = scmp.lt.s32.totalorder %s340_s11, %s340_s11 }
 0x234   : > { %p503_p5 = scmp.ne.s32.totalorder %s340_s11, %s502_s12  ;;  %p510_p9 = scmp.lt.s32.totalorder %s502_s12, %s502_s12 }
 0x236   : > { %p504_p6 = pnand %p503_p5, %p649_p4  ;;  %p511_p10 = por %p510_p9, %p509_p8 }
 0x238   : > { %p505_p7 = pneg %p504_p6 }
 0x23a   : > { %p512_p11 = pnand %p511_p10, %p505_p7 }
 0x23c   : > { %515 = shalt.err (!%p512_p11)
}
 0x23d   : > { %427 = dma.vmem_to_hbm [thread:$0]  (%p649_p4), %s340_s11, 128, %s677_s4, [#allocation6]  }
 0x23e   : > { %543 = dma.done.wait (%p649_p4), [#allocation6], 128  }
 0x23f   : > { %545 = vsyncadd (%p649_p4), [#allocation6], 4294967168 }
 0x240 PF: > { %s16_s17 = sadd.s32 1, %s556_s17   ;;  %s681_s15 = smov %s552_s16 }
 0x241   : > { %p13_p12 = scmp.ge.s32.totalorder %s16_s17, 4   ;;  %s682_s16 = smov %s684_s19 }
 0x243   :  { %15 = sbr.rel (!%p13_p12) target bundleno = 3 (0x3), region = 79 }
 0x248   :  { %352 = vsyncpa [#allocation5], 1 }
 0x249   :  { %354 = vsyncpa [#allocation5 + $0x1], 1 }
 0x24a   :  { %355 = vsyncpa [#allocation6], 1 }
 0x24b   :  { %357 = vsyncpa [#allocation6 + $0x1], 1 }

</bundles_post_ra>
